<compile_context>
chip_gen: v6e
topology: v6e:2x2x1
jax: 0.10.0
libtpu: 0.0.40
codegen_flags: <defaults>
</compile_context>

<pallas_src>
import jax
import jax.numpy as jnp
from jax import lax
from jax.experimental import pallas as pl
from jax.experimental.pallas import tpu as pltpu

_LANES = 128
_SAMPLES_PER_ROW = _LANES // 2   # 64 samples per 128-lane row (2 features each)
_CHUNK = 32                      # sublane rows per inner-loop step (4 vregs/value)


def _round_up(n, m):
    return ((n + m - 1) // m) * m


def mlp_kernel(x_ref, w1_ref, b1_ref, w2_ref, b2_ref, o_ref):
    # x_ref / o_ref: [TS, 128] VMEM, interleaved lanes (even lane = feature 0,
    #                odd lane = feature 1 of the same sample).
    # w1_ref: [4, 2] SMEM, b1_ref: [4] SMEM   (torch convention: [out, in])
    # w2_ref: [2, 4] SMEM, b2_ref: [2] SMEM
    ts = x_ref.shape[0]
    n_chunks = ts // _CHUNK

    # Hoisted per-lane constants (one set per grid step, reused by every chunk).
    lane = lax.broadcasted_iota(jnp.int32, (_CHUNK, _LANES), 1)
    is_even = (lane & 1) == 0
    # Even lanes emit output feature 0, odd lanes feature 1 -> pick fc2 row per lane.
    w2s = [jnp.where(is_even, w2_ref[0, j], w2_ref[1, j]) for j in range(4)]
    b2s = jnp.where(is_even, b2_ref[0], b2_ref[1])

    def chunk_body(c, carry):
        r0 = pl.multiple_of(c * _CHUNK, _CHUNK)
        xv = x_ref[pl.ds(r0, _CHUNK), :]
        # Lane-pair exchange on the XLU: partner of lane l is lane l ^ 1.
        x_prev = pltpu.roll(xv, shift=1, axis=1)    # lane l <- xv[l-1]
        x_next = pltpu.roll(xv, shift=127, axis=1)  # lane l <- xv[l+1]
        x0 = jnp.where(is_even, xv, x_prev)   # feature 0 of this lane's sample
        x1 = jnp.where(is_even, x_next, xv)   # feature 1 of this lane's sample

        # fc1 + ReLU + fc2, fully unrolled VPU FMAs with SMEM scalar weights.
        acc = b2s
        for j in range(4):
            hj = jnp.maximum(w1_ref[j, 0] * x0 + w1_ref[j, 1] * x1 + b1_ref[j], 0.0)
            acc = acc + hj * w2s[j]
        o_ref[pl.ds(r0, _CHUNK), :] = acc.astype(o_ref.dtype)
        return carry

    lax.fori_loop(0, n_chunks, chunk_body, 0)


def net_forward(x, w1, b1, w2, b2, *, max_rows_per_tile=4096):
    """x: [B, 2] f32. Weights in torch convention: w1 [4,2], b1 [4], w2 [2,4], b2 [2]."""
    B = x.shape[0]
    assert x.shape[1] == 2

    rows_needed = pl.cdiv(B, _SAMPLES_PER_ROW)
    max_ts = max(_CHUNK, (max_rows_per_tile // _CHUNK) * _CHUNK)  # keep CHUNK-aligned
    # Give v7x's second TensorCore work once the batch is big enough to matter.
    min_tiles = 2 if rows_needed > 2 * _CHUNK else 1
    ts = min(max_ts, _round_up(pl.cdiv(rows_needed, min_tiles), _CHUNK))
    n_tiles = pl.cdiv(rows_needed, ts)
    n_rows = n_tiles * ts
    b_pad = n_rows * _SAMPLES_PER_ROW

    # Free reshape: (B, 2) row-major flat order == interleaved 128-lane rows.
    x_flat = x.reshape(-1)
    if b_pad != B:
        # Only copies when B is not already tile-aligned.
        x_flat = jnp.pad(x_flat, (0, 2 * (b_pad - B)))
    x_tiled = x_flat.reshape(n_rows, _LANES)

    smem = pl.BlockSpec(memory_space=pltpu.MemorySpace.SMEM)
    out_tiled = pl.pallas_call(
        mlp_kernel,
        out_shape=jax.ShapeDtypeStruct((n_rows, _LANES), x.dtype),
        grid=(n_tiles,),
        in_specs=[
            pl.BlockSpec((ts, _LANES), lambda i: (i, 0)),  # x tile
            smem,  # w1
            smem,  # b1
            smem,  # w2
            smem,  # b2
        ],
        out_specs=pl.BlockSpec((ts, _LANES), lambda i: (i, 0)),
        compiler_params=pltpu.CompilerParams(
            dimension_semantics=("parallel",),
        ),
        cost_estimate=pl.CostEstimate(
            flops=36 * b_pad,
            transcendentals=0,
            bytes_accessed=2 * n_rows * _LANES * 4 + (8 + 4 + 8 + 2) * 4,
        ),
    )(x_tiled, w1, b1, w2, b2)

    # Back to the [B, 2] convention of the PyTorch module (free reshape; the
    # slice only copies when padding was added).
    out = out_tiled.reshape(b_pad, 2)
    return out if b_pad == B else out[:B]


def init_params(key):
    """Deterministic init mimicking nn.Linear uniform(-1/sqrt(fan_in), 1/sqrt(fan_in))."""
    k1, k2, k3, k4 = jax.random.split(key, 4)
    bound1 = 1.0 / jnp.sqrt(2.0)
    w1 = jax.random.uniform(k1, (4, 2), jnp.float32, -bound1, bound1)  # [out, in]
    b1 = jax.random.uniform(k2, (4,), jnp.float32, -bound1, bound1)
    bound2 = 1.0 / jnp.sqrt(4.0)
    w2 = jax.random.uniform(k3, (2, 4), jnp.float32, -bound2, bound2)  # [out, in]
    b2 = jax.random.uniform(k4, (2,), jnp.float32, -bound2, bound2)
    return w1, b1, w2, b2


def _reference(x, w1, b1, w2, b2):
    # Same math as torch: relu(x @ W1.T + b1) @ W2.T + b2
    return jnp.maximum(x @ w1.T + b1, 0.0) @ w2.T + b2


if __name__ == "__main__":
    key = jax.random.PRNGKey(0)
    kx1, kx2, kx3, kp = jax.random.split(key, 4)
    w1, b1, w2, b2 = init_params(kp)

    # Tiny batch (single tile, padded interleaved rows).
    x1 = jax.random.normal(kx1, (8, 2), jnp.float32)
    o1 = jax.block_until_ready(net_forward(x1, w1, b1, w2, b2))
    assert o1.shape == (8, 2)
    assert jnp.allclose(o1, _reference(x1, w1, b1, w2, b2), atol=1e-4), "mismatch (B=8)"

    # Ragged batch (exercises the padding path).
    x2 = jax.random.normal(kx2, (300, 2), jnp.float32)
    o2 = jax.block_until_ready(net_forward(x2, w1, b1, w2, b2))
    assert o2.shape == (300, 2)
    assert jnp.allclose(o2, _reference(x2, w1, b1, w2, b2), atol=1e-4), "mismatch (B=300)"

    # Multi-tile grid path (small tile override keeps the test cheap).
    x3 = jax.random.normal(kx3, (5000, 2), jnp.float32)
    o3 = jax.block_until_ready(net_forward(x3, w1, b1, w2, b2, max_rows_per_tile=32))
    assert o3.shape == (5000, 2)
    assert jnp.allclose(o3, _reference(x3, w1, b1, w2, b2), atol=1e-4), "mismatch (B=5000)"

    print("KERNEL_OK")
</pallas_src>

<mosaic_0001>
module attributes {stable_mosaic.version = 11 : i64} {
  func.func @mlp_kernel(%arg0: i32, %arg1: memref<32x128xf32, #tpu.memory_space<vmem>>, %arg2: memref<4x2xf32, #tpu.memory_space<smem>>, %arg3: memref<4xf32, #tpu.memory_space<smem>>, %arg4: memref<2x4xf32, #tpu.memory_space<smem>>, %arg5: memref<2xf32, #tpu.memory_space<smem>>, %arg6: memref<32x128xf32, #tpu.memory_space<vmem>>) attributes {dimension_semantics = [#tpu.dimension_semantics<parallel>], iteration_bounds = array<i64: 1>, scalar_prefetch = 0 : i64, scratch_operands = 0 : i64, tpu.core_type = #tpu.core_type<tc>, window_params = [{transform_indices = @transform_0, window_bounds = array<i64: 32, 128>}, {transform_indices = @transform_1, window_bounds = array<i64: 4, 2>}, {transform_indices = @transform_2, window_bounds = array<i64: 4>}, {transform_indices = @transform_3, window_bounds = array<i64: 2, 4>}, {transform_indices = @transform_4, window_bounds = array<i64: 2>}, {transform_indices = @transform_5, window_bounds = array<i64: 32, 128>}]} {
    %0 = tpu.iota {dimensions = array<i32: 1>} : vector<32x128xi32>
    %c1_i32 = arith.constant 1 : i32
    %1 = vector.broadcast %c1_i32 : i32 to vector<32x128xi32>
    %2 = arith.andi %0, %1 : vector<32x128xi32>
    %c0_i32 = arith.constant 0 : i32
    %3 = vector.broadcast %c0_i32 : i32 to vector<32x128xi32>
    %4 = arith.cmpi eq, %2, %3 : vector<32x128xi32>
    %c0 = arith.constant 0 : index
    %c0_0 = arith.constant 0 : index
    %5 = memref.load %arg4[%c0, %c0_0] : memref<2x4xf32, #tpu.memory_space<smem>>
    %c1 = arith.constant 1 : index
    %c0_1 = arith.constant 0 : index
    %6 = memref.load %arg4[%c1, %c0_1] : memref<2x4xf32, #tpu.memory_space<smem>>
    %7 = vector.broadcast %5 : f32 to vector<32x128xf32>
    %8 = vector.broadcast %6 : f32 to vector<32x128xf32>
    %9 = arith.select %4, %7, %8 : vector<32x128xi1>, vector<32x128xf32>
    %c0_2 = arith.constant 0 : index
    %c1_3 = arith.constant 1 : index
    %10 = memref.load %arg4[%c0_2, %c1_3] : memref<2x4xf32, #tpu.memory_space<smem>>
    %c1_4 = arith.constant 1 : index
    %c1_5 = arith.constant 1 : index
    %11 = memref.load %arg4[%c1_4, %c1_5] : memref<2x4xf32, #tpu.memory_space<smem>>
    %12 = vector.broadcast %10 : f32 to vector<32x128xf32>
    %13 = vector.broadcast %11 : f32 to vector<32x128xf32>
    %14 = arith.select %4, %12, %13 : vector<32x128xi1>, vector<32x128xf32>
    %c0_6 = arith.constant 0 : index
    %c2 = arith.constant 2 : index
    %15 = memref.load %arg4[%c0_6, %c2] : memref<2x4xf32, #tpu.memory_space<smem>>
    %c1_7 = arith.constant 1 : index
    %c2_8 = arith.constant 2 : index
    %16 = memref.load %arg4[%c1_7, %c2_8] : memref<2x4xf32, #tpu.memory_space<smem>>
    %17 = vector.broadcast %15 : f32 to vector<32x128xf32>
    %18 = vector.broadcast %16 : f32 to vector<32x128xf32>
    %19 = arith.select %4, %17, %18 : vector<32x128xi1>, vector<32x128xf32>
    %c0_9 = arith.constant 0 : index
    %c3 = arith.constant 3 : index
    %20 = memref.load %arg4[%c0_9, %c3] : memref<2x4xf32, #tpu.memory_space<smem>>
    %c1_10 = arith.constant 1 : index
    %c3_11 = arith.constant 3 : index
    %21 = memref.load %arg4[%c1_10, %c3_11] : memref<2x4xf32, #tpu.memory_space<smem>>
    %22 = vector.broadcast %20 : f32 to vector<32x128xf32>
    %23 = vector.broadcast %21 : f32 to vector<32x128xf32>
    %24 = arith.select %4, %22, %23 : vector<32x128xi1>, vector<32x128xf32>
    %c0_12 = arith.constant 0 : index
    %25 = memref.load %arg5[%c0_12] : memref<2xf32, #tpu.memory_space<smem>>
    %c1_13 = arith.constant 1 : index
    %26 = memref.load %arg5[%c1_13] : memref<2xf32, #tpu.memory_space<smem>>
    %27 = vector.broadcast %25 : f32 to vector<32x128xf32>
    %28 = vector.broadcast %26 : f32 to vector<32x128xf32>
    %29 = arith.select %4, %27, %28 : vector<32x128xi1>, vector<32x128xf32>
    %c0_i32_14 = arith.constant 0 : i32
    %c32_i32 = arith.constant 32 : i32
    %30 = arith.muli %c0_i32_14, %c32_i32 : i32
    %31 = tpu.assume_multiple %30, 32 : i32
    %32 = arith.index_cast %31 : i32 to index
    %c0_15 = arith.constant 0 : index
    %33 = vector.load %arg1[%32, %c0_15] : memref<32x128xf32, #tpu.memory_space<vmem>>, vector<32x128xf32>
    %c1_i32_16 = arith.constant 1 : i32
    %34 = tpu.dynamic_rotate %33 by %c1_i32_16 dim 1 : vector<32x128xf32>, i32 -> vector<32x128xf32>
    %c127_i32 = arith.constant 127 : i32
    %35 = tpu.dynamic_rotate %33 by %c127_i32 dim 1 : vector<32x128xf32>, i32 -> vector<32x128xf32>
    %36 = arith.select %4, %33, %34 : vector<32x128xi1>, vector<32x128xf32>
    %37 = arith.select %4, %35, %33 : vector<32x128xi1>, vector<32x128xf32>
    %c0_17 = arith.constant 0 : index
    %c0_18 = arith.constant 0 : index
    %38 = memref.load %arg2[%c0_17, %c0_18] : memref<4x2xf32, #tpu.memory_space<smem>>
    %39 = vector.broadcast %38 : f32 to vector<32x128xf32>
    %40 = arith.mulf %39, %36 : vector<32x128xf32>
    %c0_19 = arith.constant 0 : index
    %c1_20 = arith.constant 1 : index
    %41 = memref.load %arg2[%c0_19, %c1_20] : memref<4x2xf32, #tpu.memory_space<smem>>
    %42 = vector.broadcast %41 : f32 to vector<32x128xf32>
    %43 = arith.mulf %42, %37 : vector<32x128xf32>
    %44 = arith.addf %40, %43 : vector<32x128xf32>
    %c0_21 = arith.constant 0 : index
    %45 = memref.load %arg3[%c0_21] : memref<4xf32, #tpu.memory_space<smem>>
    %46 = vector.broadcast %45 : f32 to vector<32x128xf32>
    %47 = arith.addf %44, %46 : vector<32x128xf32>
    %cst = arith.constant 0.000000e+00 : f32
    %48 = vector.broadcast %cst : f32 to vector<32x128xf32>
    %49 = arith.maximumf %47, %48 : vector<32x128xf32>
    %50 = arith.mulf %49, %9 : vector<32x128xf32>
    %51 = arith.addf %29, %50 : vector<32x128xf32>
    %c1_22 = arith.constant 1 : index
    %c0_23 = arith.constant 0 : index
    %52 = memref.load %arg2[%c1_22, %c0_23] : memref<4x2xf32, #tpu.memory_space<smem>>
    %53 = vector.broadcast %52 : f32 to vector<32x128xf32>
    %54 = arith.mulf %53, %36 : vector<32x128xf32>
    %c1_24 = arith.constant 1 : index
    %c1_25 = arith.constant 1 : index
    %55 = memref.load %arg2[%c1_24, %c1_25] : memref<4x2xf32, #tpu.memory_space<smem>>
    %56 = vector.broadcast %55 : f32 to vector<32x128xf32>
    %57 = arith.mulf %56, %37 : vector<32x128xf32>
    %58 = arith.addf %54, %57 : vector<32x128xf32>
    %c1_26 = arith.constant 1 : index
    %59 = memref.load %arg3[%c1_26] : memref<4xf32, #tpu.memory_space<smem>>
    %60 = vector.broadcast %59 : f32 to vector<32x128xf32>
    %61 = arith.addf %58, %60 : vector<32x128xf32>
    %cst_27 = arith.constant 0.000000e+00 : f32
    %62 = vector.broadcast %cst_27 : f32 to vector<32x128xf32>
    %63 = arith.maximumf %61, %62 : vector<32x128xf32>
    %64 = arith.mulf %63, %14 : vector<32x128xf32>
    %65 = arith.addf %51, %64 : vector<32x128xf32>
    %c2_28 = arith.constant 2 : index
    %c0_29 = arith.constant 0 : index
    %66 = memref.load %arg2[%c2_28, %c0_29] : memref<4x2xf32, #tpu.memory_space<smem>>
    %67 = vector.broadcast %66 : f32 to vector<32x128xf32>
    %68 = arith.mulf %67, %36 : vector<32x128xf32>
    %c2_30 = arith.constant 2 : index
    %c1_31 = arith.constant 1 : index
    %69 = memref.load %arg2[%c2_30, %c1_31] : memref<4x2xf32, #tpu.memory_space<smem>>
    %70 = vector.broadcast %69 : f32 to vector<32x128xf32>
    %71 = arith.mulf %70, %37 : vector<32x128xf32>
    %72 = arith.addf %68, %71 : vector<32x128xf32>
    %c2_32 = arith.constant 2 : index
    %73 = memref.load %arg3[%c2_32] : memref<4xf32, #tpu.memory_space<smem>>
    %74 = vector.broadcast %73 : f32 to vector<32x128xf32>
    %75 = arith.addf %72, %74 : vector<32x128xf32>
    %cst_33 = arith.constant 0.000000e+00 : f32
    %76 = vector.broadcast %cst_33 : f32 to vector<32x128xf32>
    %77 = arith.maximumf %75, %76 : vector<32x128xf32>
    %78 = arith.mulf %77, %19 : vector<32x128xf32>
    %79 = arith.addf %65, %78 : vector<32x128xf32>
    %c3_34 = arith.constant 3 : index
    %c0_35 = arith.constant 0 : index
    %80 = memref.load %arg2[%c3_34, %c0_35] : memref<4x2xf32, #tpu.memory_space<smem>>
    %81 = vector.broadcast %80 : f32 to vector<32x128xf32>
    %82 = arith.mulf %81, %36 : vector<32x128xf32>
    %c3_36 = arith.constant 3 : index
    %c1_37 = arith.constant 1 : index
    %83 = memref.load %arg2[%c3_36, %c1_37] : memref<4x2xf32, #tpu.memory_space<smem>>
    %84 = vector.broadcast %83 : f32 to vector<32x128xf32>
    %85 = arith.mulf %84, %37 : vector<32x128xf32>
    %86 = arith.addf %82, %85 : vector<32x128xf32>
    %c3_38 = arith.constant 3 : index
    %87 = memref.load %arg3[%c3_38] : memref<4xf32, #tpu.memory_space<smem>>
    %88 = vector.broadcast %87 : f32 to vector<32x128xf32>
    %89 = arith.addf %86, %88 : vector<32x128xf32>
    %cst_39 = arith.constant 0.000000e+00 : f32
    %90 = vector.broadcast %cst_39 : f32 to vector<32x128xf32>
    %91 = arith.maximumf %89, %90 : vector<32x128xf32>
    %92 = arith.mulf %91, %24 : vector<32x128xf32>
    %93 = arith.addf %79, %92 : vector<32x128xf32>
    %94 = arith.index_cast %31 : i32 to index
    %c0_40 = arith.constant 0 : index
    %95 = vector.load %arg6[%94, %c0_40] : memref<32x128xf32, #tpu.memory_space<vmem>>, vector<32x128xf32>
    tpu.vector_store %arg6[%94, %c0_40], %93 {strides = array<i32>} : memref<32x128xf32, #tpu.memory_space<vmem>>, vector<32x128xf32>,
    %c1_i32_41 = arith.constant 1 : i32
    return
  }
  func.func @transform_0(%arg0: i32) -> (i32, i32) {
    %c0_i32 = arith.constant 0 : i32
    %c0_i32_0 = arith.constant 0 : i32
    return %arg0, %c0_i32 : i32, i32
  }
  func.func @transform_1(%arg0: i32) -> (i32, i32) {
    %c0_i32 = arith.constant 0 : i32
    %c0_i32_0 = arith.constant 0 : i32
    %c0_i32_1 = arith.constant 0 : i32
    return %c0_i32, %c0_i32_0 : i32, i32
  }
  func.func @transform_2(%arg0: i32) -> i32 {
    %c0_i32 = arith.constant 0 : i32
    %c0_i32_0 = arith.constant 0 : i32
    return %c0_i32 : i32
  }
  func.func @transform_3(%arg0: i32) -> (i32, i32) {
    %c0_i32 = arith.constant 0 : i32
    %c0_i32_0 = arith.constant 0 : i32
    %c0_i32_1 = arith.constant 0 : i32
    return %c0_i32, %c0_i32_0 : i32, i32
  }
  func.func @transform_4(%arg0: i32) -> i32 {
    %c0_i32 = arith.constant 0 : i32
    %c0_i32_0 = arith.constant 0 : i32
    return %c0_i32 : i32
  }
  func.func @transform_5(%arg0: i32) -> (i32, i32) {
    %c0_i32 = arith.constant 0 : i32
    %c0_i32_0 = arith.constant 0 : i32
    return %arg0, %c0_i32 : i32, i32
  }
}

</mosaic_0001>

<bundles_post_ra>
// kernel: tpu_custom_call.1
= control target key start
LH: loop header
LB: loop body
LE: loop exit
PB: predicated region body
PF: predicated region fallthrough
CT: control target
= control target key end

     0   :  { %10 = vsyncpa [#allocation3], 0  ;;  %s677_s0 = inlined_call_operand.hbm [shape: f32[32,128], index: 0, kind: input, shape index: {}]   ;;  %s678_s1 = inlined_call_operand.vmem [shape: f32[4,2], index: 1, kind: input, shape index: {}]   ;;  %s679_s2 = inlined_call_operand.vmem [shape: f32[4], index: 2, kind: input, shape index: {}]   ;;  %s680_s3 = inlined_call_operand.vmem [shape: f32[2,4], index: 3, kind: input, shape index: {}]   ;;  %s681_s4 = inlined_call_operand.vmem [shape: f32[2], index: 4, kind: input, shape index: {}]   ;;  %s682_s5 = inlined_call_operand.hbm [shape: f32[32,128], index: 5, kind: output, shape index: {}]  }
   0x1   :  { %11 = vsyncpa [#allocation5], 0 }
   0x2   :  { %12 = vsyncpa [#allocation8], 0 }
   0x3   :  { %13 = vsyncpa [#allocation11], 0  ;;  %s43_s20 = sshll.u32 %s679_s2, 4  ;;  %s44_s20 = int_to_ptr.vmem [resolvable:$true] %s43_s20 }
   0x4   :  { %14 = vsyncpa [#allocation4], 0  ;;  %s328_s21 = scalar_lea.vmem %s44_s20, 16  ;;  %p333_p1 = scmp.lt.s32.totalorder %s44_s20, %s44_s20 }
   0x5   :  { %p329_p0 = scmp.ne.s32.totalorder %s44_s20, %s328_s21  ;;  %p334_p2 = scmp.lt.s32.totalorder %s328_s21, %s328_s21 }
   0x7   :  { %p335_p3 = por %p334_p2, %p333_p1 }
   0x9   :  { %p336_p4 = pnand %p335_p3, %p329_p0 }
   0xb   :  { %339 = shalt.err (!%p336_p4)
}
   0xc   :  { %s426_s22 = smov [#allocation7]   ;;  %s427_s23 = smov [#allocation2]  }
   0xd   :  { %46 = dma.vmem_to_smem %s44_s20, 16, %s426_s22, [#allocation8]  }
   0xe   :  { %s20_s24 = sshll.u32 %s427_s23, 4  ;;  %s21_s24 = int_to_ptr.vmem [resolvable:$true] %s20_s24 }
   0xf   :  { %s348_s25 = scalar_lea.vmem %s21_s24, 512  ;;  %p353_p6 = scmp.lt.s32.totalorder %s21_s24, %s21_s24 }
  0x10   :  { %p349_p5 = scmp.ne.s32.totalorder %s21_s24, %s348_s25  ;;  %p354_p7 = scmp.lt.s32.totalorder %s348_s25, %s348_s25 }
  0x12   :  { %p355_p8 = por %p354_p7, %p353_p6 }
  0x14   :  { %p356_p9 = pnand %p355_p8, %p349_p5 }
  0x16   :  { %359 = shalt.err (!%p356_p9)
}
  0x17   :  { %s428_s2 = smov 128   ;;  %s429_s26 = smov 8  }
  0x18   :  { %26 = dma.hbm_to_vmem [thread:$0]  %s677_s0, 512, %s21_s24, [#allocation3], %s428_s2, %s428_s2, %s429_s26  }
  0x19   :  { %s33_s6 = sshll.u32 %s678_s1, 4  ;;  %s53_s9 = sshll.u32 %s680_s3, 4  ;;  %s34_s6 = int_to_ptr.vmem [resolvable:$true] %s33_s6  ;;  %s54_s9 = int_to_ptr.vmem [resolvable:$true] %s53_s9 }
  0x1a   :  { %s360_s10 = scalar_lea.vmem %s34_s6, 64  ;;  %p365_p11 = scmp.lt.s32.totalorder %s34_s6, %s34_s6 }
  0x1b   :  { %p361_p10 = scmp.ne.s32.totalorder %s34_s6, %s360_s10  ;;  %p366_p12 = scmp.lt.s32.totalorder %s360_s10, %s360_s10 }
  0x1d   :  { %p367_p13 = por %p366_p12, %p365_p11 }
  0x1f   :  { %p368_p0 = pnand %p367_p13, %p361_p10 }
  0x21   :  { %371 = shalt.err (!%p368_p0)
}
  0x22   :  { %s430_s11 = smov [#allocation6]   ;;  %s372_s0 = scalar_lea.vmem %s54_s9, 32 }
  0x23   :  { %36 = dma.vmem_to_smem %s34_s6, 64, %s430_s11, [#allocation5]  }
  0x24   :  { %p373_p1 = scmp.ne.s32.totalorder %s54_s9, %s372_s0  ;;  %p377_p2 = scmp.lt.s32.totalorder %s54_s9, %s54_s9 }
  0x25   :  { %p378_p3 = scmp.lt.s32.totalorder %s372_s0, %s372_s0 }
  0x27   :  { %p379_p4 = por %p378_p3, %p377_p2 }
  0x29   :  { %p380_p5 = pnand %p379_p4, %p373_p1 }
  0x2b   :  { %383 = shalt.err (!%p380_p5)
}
  0x2c   :  { %s431_s1 = smov [#allocation9]   ;;  %s63_s13 = sshll.u32 %s681_s4, 4  ;;  %s64_s13 = int_to_ptr.vmem [resolvable:$true] %s63_s13 }
  0x2d   :  { %56 = dma.vmem_to_smem %s54_s9, 32, %s431_s1, [#allocation8]  }
  0x2e   :  { %s384_s14 = scalar_lea.vmem %s64_s13, 16  ;;  %p389_p7 = scmp.lt.s32.totalorder %s64_s13, %s64_s13 }
  0x2f   :  { %p385_p6 = scmp.ne.s32.totalorder %s64_s13, %s384_s14  ;;  %p390_p8 = scmp.lt.s32.totalorder %s384_s14, %s384_s14 }
  0x31   :  { %p391_p9 = por %p390_p8, %p389_p7 }
  0x33   :  { %p392_p10 = pnand %p391_p9, %p385_p6 }
  0x35   :  { %395 = shalt.err (!%p392_p10)
}
  0x36   :  { %s432_s15 = smov [#allocation10]  }
  0x37   :  { %66 = dma.vmem_to_smem %s64_s13, 16, %s432_s15, [#allocation11]  }
  0x38   :  { %416 = dma.done.wait [#allocation3], 512  }
  0x39   :  { %417 = vsyncadd [#allocation3], 4294966784 }
  0x3a   :  { %418 = dma.done.wait [#allocation5], 64  }
  0x3b   :  { %419 = vsyncadd [#allocation5], 4294967232 }
  0x3c   :  { %420 = dma.done.wait [#allocation8], 48  }
  0x3d   :  { %421 = vsyncadd [#allocation8], 4294967248 }
  0x3e   :  { %422 = dma.done.wait [#allocation11], 16  }
  0x3f   :  { %423 = vsyncadd [#allocation11], 4294967280 }
  0x40   :  { %82 = sfence }
  0x41   :  { %v484_v0 = vld [vmem:[#allocation2 + $0x10] sm:$0xff]  ;;  %v486_v1 = vld [vmem:[#allocation2] sm:$0xff]  ;;  %s433_s4 = smov 1   ;;  %v490_v2 = vld [vmem:[#allocation2 + $0x18] sm:$0xff]  ;;  %s434_s16 = smov 127   ;;  %v83_v4 = vlaneseq }
  0x42   :  { %120 = vrot.lane.b32.xlu1 %v484_v0, %s433_s4  ;;  %116 = vrot.lane.b32.xlu0 %v486_v1, %s433_s4  ;;  %v492_v3 = vld [vmem:[#allocation2 + $0x8] sm:$0xff]  ;;  %s140_s17 = sld [smem:[#allocation6]]  ;;  %s435_s12 = smov [#allocation12]  }
  0x43   :  { %s309_s18 = sld [smem:[#allocation6 + $0x80]]  ;;  %v84_v5 = vand.u32 127, %v83_v4  ;;  %s285_s13 = sshll.u32 %s435_s12, 4  ;;  %s286_s13 = int_to_ptr.vmem [resolvable:$true] %s285_s13 }
  0x44   :  { %s312_s19 = sld [smem:[#allocation6 + $0x100]]  ;;  %s396_s14 = scalar_lea.vmem %s286_s13, 512 }
  0x45   :  { %s315_s20 = sld [smem:[#allocation6 + $0x180]]  ;;  %v85_v6 = vand.u32 1, %v84_v5  ;;  %p397_p11 = scmp.ne.s32.totalorder %s286_s13, %s396_s14 }
  0x46   :  { %122 = vrot.lane.b32.xlu1 %v490_v2, %s433_s4  ;;  %118 = vrot.lane.b32.xlu0 %v492_v3, %s433_s4  ;;  %s308_s21 = sld [smem:[#allocation6 + $0x1]]  ;;  %p401_p12 = scmp.lt.s32.totalorder %s286_s13, %s286_s13 }
  0x47   :  { %s156_s22 = sld [smem:[#allocation7]]  ;;  %vm526_vm0 = vcmp.eq.s32.totalorder %v85_v6, 0  ;;  %p402_p13 = scmp.lt.s32.totalorder %s396_s14, %s396_s14 }
  0x48   :  { %s310_s23 = sld [smem:[#allocation6 + $0x81]]  ;;  %v141_v8 = vstv %s140_s17 }
  0x49   :  { %s311_s24 = sld [smem:[#allocation7 + $0x1]]  ;;  %v175_v9 = vstv %s309_s18  ;;  %p403_p0 = por %p402_p13, %p401_p12 }
  0x4a   :  { %126 = vrot.lane.b32.xlu1 %v492_v3, %s434_s16  ;;  %124 = vrot.lane.b32.xlu0 %v486_v1, %s434_s16  ;;  %s500_s25 = sld [smem:[#allocation6 + $0x101]]  ;;  %v209_v10 = vstv %s312_s19 }
  0x4b   :  { %s502_s27 = sld [smem:[#allocation7 + $0x2]]  ;;  %v243_v11 = vstv %s315_s20  ;;  %p404_p1 = pnand %p403_p0, %p397_p11 }
  0x4c   :  { %s504_s28 = sld [smem:[#allocation6 + $0x181]]  ;;  %v530_v12 = vstv %s308_s21 }
  0x4d   :  { %s506_s29 = sld [smem:[#allocation9]]  ;;  %v532_v13 = vstv %s156_s22 }
  0x4e   :  { %130 = vrot.lane.b32.xlu1 %v490_v2, %s434_s16  ;;  %128 = vrot.lane.b32.xlu0 %v484_v0, %s434_s16  ;;  %s508_s30 = sld [smem:[#allocation9 + $0x80]]  ;;  %v534_v14 = vstv %s310_s23 }
  0x4f   :  { %s510_s6 = sld [smem:[#allocation9 + $0x1]]  ;;  %v536_v15 = vstv %s311_s24 }
  0x50   :  { %s512_s7 = sld [smem:[#allocation9 + $0x81]]  ;;  %v550_v27 = vstv %s500_s25 }
  0x51   :  { %s514_s8 = sld [smem:[#allocation9 + $0x2]]  ;;  %v553_v28 = vstv %s502_s27 }
  0x52   :  { %s516_s9 = sld [smem:[#allocation9 + $0x82]]  ;;  %v556_v29 = vstv %s504_s28 }
  0x53   :  { %s518_s10 = sld [smem:[#allocation10]]  ;;  %v89_v18 = vstv %s506_s29 }
  0x54   :  { %s520_s11 = sld [smem:[#allocation10 + $0x1]]  ;;  %v90_v19 = vstv %s508_s30 }
  0x55   :  { %s317_s0 = sld [smem:[#allocation7 + $0x3]]  ;;  %v94_v20 = vstv %s510_s6  ;;  %v565_v32 = vsel %vm526_vm0, %v89_v18, %v90_v19 }
  0x56   :  { %s522_s1 = sld [smem:[#allocation9 + $0x3]]  ;;  %v95_v21 = vstv %s512_s7 }
  0x57   :  { %s524_s3 = sld [smem:[#allocation9 + $0x83]]  ;;  %v99_v22 = vstv %s514_s8  ;;  %v569_v33 = vsel %vm526_vm0, %v94_v20, %v95_v21 }
  0x58   :  { %v100_v23 = vstv %s516_s9 }
  0x59   :  { %v109_v24 = vstv %s518_s10  ;;  %v573_v36 = vsel %vm526_vm0, %v99_v22, %v100_v23 }
  0x5a   :  { %v110_v25 = vstv %s520_s11 }
  0x5b   :  { %v561_v31 = vstv %s317_s0  ;;  %v579_v39 = vsel %vm526_vm0, %v109_v24, %v110_v25 }
  0x5c   :  { %v104_v37 = vstv %s522_s1 }
  0x5d   :  { %v105_v38 = vstv %s524_s3 }
  0xb4   :  { %v121_v16 = vpop.permute.xlu1 %120  ;;  %v117_v17 = vpop.permute.xlu0 %116 }
  0xb5   :  { %v134_v26 = vsel %vm526_vm0, %v484_v0, %v121_v16  ;;  %v132_v30 = vsel %vm526_vm0, %v486_v1, %v117_v17 }
  0xb6   :  { %v581_v40 = vmul.f32 %v141_v8, %v134_v26  ;;  %v583_v41 = vmul.f32 %v175_v9, %v134_v26  ;;  %v591_v44 = vmul.f32 %v209_v10, %v134_v26  ;;  %v593_v45 = vmul.f32 %v243_v11, %v134_v26 }
  0xb7   :  { %v142_v46 = vmul.f32 %v141_v8, %v132_v30  ;;  %v176_v47 = vmul.f32 %v175_v9, %v132_v30  ;;  %v210_v48 = vmul.f32 %v209_v10, %v132_v30  ;;  %v244_v49 = vmul.f32 %v243_v11, %v132_v30 }
  0xb8   :  { %v123_v34 = vpop.permute.xlu1 %122  ;;  %v119_v35 = vpop.permute.xlu0 %118 }
  0xb9   :  { %v135_v42 = vsel %vm526_vm0, %v490_v2, %v123_v34  ;;  %v133_v43 = vsel %vm526_vm0, %v492_v3, %v119_v35 }
  0xba   :  { %v145_v50 = vmul.f32 %v141_v8, %v135_v42  ;;  %v179_v51 = vmul.f32 %v175_v9, %v135_v42  ;;  %v213_v52 = vmul.f32 %v209_v10, %v135_v42  ;;  %v247_v53 = vmul.f32 %v243_v11, %v135_v42 }
  0xbb   :  { %v143_v54 = vmul.f32 %v141_v8, %v133_v43  ;;  %v177_v55 = vmul.f32 %v175_v9, %v133_v43  ;;  %v211_v58 = vmul.f32 %v209_v10, %v133_v43  ;;  %v245_v59 = vmul.f32 %v243_v11, %v133_v43 }
  0xbc   :  { %v127_v56 = vpop.permute.xlu1 %126  ;;  %v125_v57 = vpop.permute.xlu0 %124 }
  0xbd   :  { %v137_v60 = vsel %vm526_vm0, %v127_v56, %v492_v3  ;;  %v136_v61 = vsel %vm526_vm0, %v125_v57, %v486_v1 }
  0xbe   :  { %v149_v62 = vmul.f32 %v530_v12, %v137_v60  ;;  %v183_v63 = vmul.f32 %v534_v14, %v137_v60  ;;  %v217_v4 = vmul.f32 %v550_v27, %v137_v60  ;;  %v251_v5 = vmul.f32 %v556_v29, %v137_v60 }
  0xbf   :  { %v148_v6 = vmul.f32 %v530_v12, %v136_v61  ;;  %v182_v8 = vmul.f32 %v534_v14, %v136_v61  ;;  %v216_v9 = vmul.f32 %v550_v27, %v136_v61  ;;  %v250_v3 = vmul.f32 %v556_v29, %v136_v61 }
  0xc0   :  { %v153_v10 = vadd.f32 %v149_v62, %v143_v54  ;;  %v187_v11 = vadd.f32 %v183_v63, %v177_v55  ;;  %v221_v16 = vadd.f32 %v217_v4, %v211_v58  ;;  %v255_v1 = vadd.f32 %v251_v5, %v245_v59  ;;  %v131_v21 = vpop.permute.xlu1 %130 }
  0xc1   :  { %v152_v17 = vadd.f32 %v148_v6, %v142_v46  ;;  %v186_v18 = vadd.f32 %v182_v8, %v176_v47  ;;  %v220_v19 = vadd.f32 %v216_v9, %v210_v48  ;;  %v254_v20 = vadd.f32 %v250_v3, %v244_v49  ;;  %v129_v48 = vpop.permute.xlu0 %128 }
  0xc2   :  { %v159_v22 = vadd.f32 %v532_v13, %v153_v10  ;;  %v193_v23 = vadd.f32 %v536_v15, %v187_v11  ;;  %v227_v24 = vadd.f32 %v553_v28, %v221_v16  ;;  %v613_v25 = vadd.f32 %v561_v31, %v255_v1 }
  0xc3   :  { %v158_v26 = vadd.f32 %v532_v13, %v152_v17  ;;  %v192_v30 = vadd.f32 %v536_v15, %v186_v18  ;;  %v226_v34 = vadd.f32 %v553_v28, %v220_v19  ;;  %v619_v35 = vadd.f32 %v561_v31, %v254_v20 }
  0xc4   :  { %v163_v42 = vmax.f32 %v159_v22, 0.0  ;;  %v197_v43 = vmax.f32 %v193_v23, 0.0  ;;  %v231_v46 = vmax.f32 %v227_v24, 0.0  ;;  %v139_v47 = vsel %vm526_vm0, %v131_v21, %v490_v2 }
  0xc5   :  { %v162_v49 = vmax.f32 %v158_v26, 0.0  ;;  %v196_v54 = vmax.f32 %v192_v30, 0.0  ;;  %v230_v55 = vmax.f32 %v226_v34, 0.0  ;;  %v151_v56 = vmul.f32 %v530_v12, %v139_v47 }
  0xc6   :  { %v167_v57 = vmul.f32 %v163_v42, %v565_v32  ;;  %v185_v58 = vmul.f32 %v534_v14, %v139_v47  ;;  %v219_v59 = vmul.f32 %v550_v27, %v139_v47  ;;  %v253_v60 = vmul.f32 %v556_v29, %v139_v47 }
  0xc7   :  { %v166_v61 = vmul.f32 %v162_v49, %v565_v32  ;;  %v155_v62 = vadd.f32 %v151_v56, %v145_v50  ;;  %v138_v2 = vsel %vm526_vm0, %v129_v48, %v484_v0  ;;  %v200_v63 = vmul.f32 %v196_v54, %v569_v33 }
  0xc8   :  { %v189_v4 = vadd.f32 %v185_v58, %v179_v51  ;;  %v223_v5 = vadd.f32 %v219_v59, %v213_v52  ;;  %v257_v6 = vadd.f32 %v253_v60, %v247_v53  ;;  %v150_v8 = vmul.f32 %v530_v12, %v138_v2 }
  0xc9   :  { %v161_v9 = vadd.f32 %v532_v13, %v155_v62  ;;  %v184_v3 = vmul.f32 %v534_v14, %v138_v2  ;;  %v218_v10 = vmul.f32 %v550_v27, %v138_v2  ;;  %v252_v11 = vmul.f32 %v556_v29, %v138_v2 }
  0xca   :  { %v195_v50 = vadd.f32 %v536_v15, %v189_v4  ;;  %v229_v16 = vadd.f32 %v553_v28, %v223_v5  ;;  %v263_v0 = vadd.f32 %v561_v31, %v257_v6  ;;  %v154_v51 = vadd.f32 %v150_v8, %v581_v40 }
  0xcb   :  { %v165_v52 = vmax.f32 %v161_v9, 0.0  ;;  %v188_v53 = vadd.f32 %v184_v3, %v583_v41  ;;  %v222_v12 = vadd.f32 %v218_v10, %v591_v44  ;;  %v256_v1 = vadd.f32 %v252_v11, %v593_v45 }
  0xcc   :  { %v199_v14 = vmax.f32 %v195_v50, 0.0  ;;  %v233_v17 = vmax.f32 %v229_v16, 0.0  ;;  %v160_v27 = vadd.f32 %v532_v13, %v154_v51  ;;  %v170_v29 = vadd.f32 %v166_v61, %v579_v39 }
  0xcd   :  { %v169_v18 = vmul.f32 %v165_v52, %v565_v32  ;;  %v194_v19 = vadd.f32 %v536_v15, %v188_v53  ;;  %v228_v40 = vadd.f32 %v553_v28, %v222_v12  ;;  %v262_v41 = vadd.f32 %v561_v31, %v256_v1 }
  0xce   :  { %v164_v20 = vmax.f32 %v160_v27, 0.0  ;;  %v171_v44 = vadd.f32 %v167_v57, %v579_v39  ;;  %v201_v45 = vmul.f32 %v197_v43, %v569_v33  ;;  %v203_v21 = vmul.f32 %v199_v14, %v569_v33 }
  0xcf   :  { %v198_v13 = vmax.f32 %v194_v19, 0.0  ;;  %v232_v22 = vmax.f32 %v228_v40, 0.0  ;;  %v173_v23 = vadd.f32 %v169_v18, %v579_v39  ;;  %v204_v24 = vadd.f32 %v200_v63, %v170_v29 }
  0xd0   :  { %v168_v26 = vmul.f32 %v164_v20, %v565_v32  ;;  %v205_v30 = vadd.f32 %v201_v45, %v171_v44  ;;  %v234_v15 = vmul.f32 %v230_v55, %v573_v36  ;;  %v235_v28 = vmul.f32 %v231_v46, %v573_v36 }
  0xd1   :  { %v106_v31 = vsel %vm526_vm0, %v104_v37, %v105_v38  ;;  %v202_v34 = vmul.f32 %v198_v13, %v569_v33  ;;  %v207_v42 = vadd.f32 %v203_v21, %v173_v23  ;;  %v237_v43 = vmul.f32 %v233_v17, %v573_v36 }
  0xd2   :  { %v172_v47 = vadd.f32 %v168_v26, %v579_v39  ;;  %v238_v48 = vadd.f32 %v234_v15, %v204_v24  ;;  %v239_v49 = vadd.f32 %v235_v28, %v205_v30  ;;  %v264_v32 = vmax.f32 %v619_v35, 0.0 }
  0xd3   :  { %v241_v54 = vadd.f32 %v237_v43, %v207_v42  ;;  %v265_v55 = vmax.f32 %v613_v25, 0.0  ;;  %v266_v46 = vmax.f32 %v262_v41, 0.0  ;;  %v267_v56 = vmax.f32 %v263_v0, 0.0 }
  0xd4   :  { %v206_v57 = vadd.f32 %v202_v34, %v172_v47  ;;  %v236_v7 = vmul.f32 %v232_v22, %v573_v36  ;;  %v268_v37 = vmul.f32 %v264_v32, %v106_v31 }
  0xd5   :  { %v269_v38 = vmul.f32 %v265_v55, %v106_v31  ;;  %v271_v33 = vmul.f32 %v267_v56, %v106_v31  ;;  %v270_v59 = vmul.f32 %v266_v46, %v106_v31 }
  0xd6   :  { %v240_v58 = vadd.f32 %v236_v7, %v206_v57  ;;  %v272_v39 = vadd.f32 %v268_v37, %v238_v48 }
  0xd7   :  { %v273_v60 = vadd.f32 %v269_v38, %v239_v49  ;;  %v275_v61 = vadd.f32 %v271_v33, %v241_v54 }
  0xd8   :  { %v274_v62 = vadd.f32 %v270_v59, %v240_v58  ;;  %276 = vst [vmem:[#allocation12] sm:$0xff] %v272_v39 }
  0xd9   :  { %277 = vst [vmem:[#allocation12 + $0x8] sm:$0xff] %v273_v60  ;;  %279 = vst [vmem:[#allocation12 + $0x18] sm:$0xff] %v275_v61 }
  0xda   :  { %278 = vst [vmem:[#allocation12 + $0x10] sm:$0xff] %v274_v62 }
  0xdb   :  { %407 = shalt.err (!%p404_p1)
}
  0xdc   :  { %291 = dma.vmem_to_hbm [thread:$0]  %s286_s13, 512, %s682_s5, [#allocation4], %s428_s2, %s428_s2, %s429_s26  }
  0xdd   :  { %424 = dma.done.wait [#allocation4], 512  }
  0xde   :  { %425 = vsyncadd [#allocation4], 4294966784 }
  0xdf   :  { %295 = vsyncpa [#allocation3], 1 }
  0xe0   :  { %296 = vsyncpa [#allocation4], 1 }
  0xe1   :  { %297 = vsyncpa [#allocation5], 1 }
  0xe2   :  { %298 = vsyncpa [#allocation8], 1 }
  0xe3   :  { %299 = vsyncpa [#allocation11], 1 }

</bundles_post_ra>
